<compile_context>
chip_gen: v7x
topology: tpu7x:2x2x1
jax: 0.10.0
libtpu: 0.0.40
codegen_flags: <defaults>
</compile_context>

<pallas_src>
import functools

import jax
import jax.numpy as jnp
import numpy as np
from jax.experimental import pallas as pl
from jax.experimental.pallas import tpu as pltpu


# ----------------------------------------------------------------------------
# Fused bidirectional LSTM kernel
#   x layout:    (Tp*Bp, 2E)  time-major, row t*Bp+b; [emb_fwd | emb_bwd]
#   gate layout: [i | f | o | g], each 2H = [fwd H | bwd H] wide
#   state:       h, c are (Bp, 2H) = [fwd | bwd], carried in VMEM scratch
# ----------------------------------------------------------------------------
def bilstm_kernel(x_ref, wx_ref, wh_ref, b_ref, out_ref,
                  gx_scr, h_scr, c_scr, *, tblk, hdim):
    @pl.when(pl.program_id(0) == 0)
    def _():
        h_scr[...] = jnp.zeros_like(h_scr)
        c_scr[...] = jnp.zeros_like(c_scr)

    H2 = 2 * hdim
    bp = h_scr.shape[0]

    # Hoisted block-wide input projection (+ bias): one big MXU matmul.
    gx_scr[...] = (jnp.dot(x_ref[...], wx_ref[...],
                           preferred_element_type=jnp.float32)
                   + b_ref[...])                              # (TBLK*Bp, 8H)

    wh = wh_ref[...]                                          # (2H, 8H) bf16

    unroll = min(8, tblk)
    n_outer = tblk // unroll

    def outer(oi, carry):
        h, c = carry
        base = pl.multiple_of(oi * unroll, unroll)
        for u in range(unroll):                               # partial unroll
            row = pl.multiple_of((base + u) * bp, bp)
            gates = (gx_scr[pl.ds(row, bp), :]
                     + jnp.dot(h.astype(jnp.bfloat16), wh,
                               preferred_element_type=jnp.float32))
            sig = jax.nn.sigmoid(gates[:, :3 * H2])           # i|f|o at once
            i_g = sig[:, 0:H2]
            f_g = sig[:, H2:2 * H2]
            o_g = sig[:, 2 * H2:3 * H2]
            g_g = jnp.tanh(gates[:, 3 * H2:])
            c = f_g * c + i_g * g_g
            h = o_g * jnp.tanh(c)
            out_ref[pl.ds(row, bp), :] = h
        return (h, c)

    hT, cT = jax.lax.fori_loop(0, n_outer, outer, (h_scr[...], c_scr[...]))
    h_scr[...] = hT
    c_scr[...] = cT


def run_bilstm(x_flat, wx, wh, bias, hdim, tblk, bp):
    """x_flat: (Tp*Bp, 2E) bf16. Returns (Tp, Bp, 2H) f32 ([fwd H | bwd H])."""
    TB, E2 = x_flat.shape
    Tp = TB // bp
    nb = Tp // tblk
    out = pl.pallas_call(
        functools.partial(bilstm_kernel, tblk=tblk, hdim=hdim),
        out_shape=jax.ShapeDtypeStruct((TB, 2 * hdim), jnp.float32),
        grid_spec=pltpu.PrefetchScalarGridSpec(
            num_scalar_prefetch=0,
            grid=(nb,),
            in_specs=[
                pl.BlockSpec((tblk * bp, E2), lambda t: (t, 0)),
                pl.BlockSpec(wx.shape, lambda t: (0, 0)),
                pl.BlockSpec(wh.shape, lambda t: (0, 0)),
                pl.BlockSpec(bias.shape, lambda t: (0, 0)),
            ],
            out_specs=pl.BlockSpec((tblk * bp, 2 * hdim), lambda t: (t, 0)),
            scratch_shapes=[
                pltpu.VMEM((tblk * bp, 8 * hdim), jnp.float32),   # gates_x
                pltpu.VMEM((bp, 2 * hdim), jnp.float32),          # h carry
                pltpu.VMEM((bp, 2 * hdim), jnp.float32),          # c carry
            ],
        ),
        compiler_params=pltpu.CompilerParams(
            dimension_semantics=("arbitrary",),      # serial recurrence
            vmem_limit_bytes=32 * 1024 * 1024),
    )(x_flat, wx, wh, bias)
    return out.reshape(Tp, bp, 2 * hdim)


def build_fused_lstm_weights(wih_f_t, whh_f_t, b_f, wih_b_t, whh_b_t, b_b):
    """Block-diagonal fused weights, split into W_x / W_hh / bias.

    Rows of W_x:  [x_f (E) | x_b (E)];  rows of W_hh: [h_f (H) | h_b (H)].
    Columns (both): [i_f|i_b | f_f|f_b | o_f|o_b | g_f|g_b] (each H wide),
    i.e. dest gate order i,f,o,g so the sigmoid gates are contiguous.
    Source params use gate order i,f,g,o.
    """
    E = wih_f_t.shape[0]
    H = whh_f_t.shape[0]
    Wx = jnp.zeros((2 * E, 8 * H), jnp.float32)
    Wh = jnp.zeros((2 * H, 8 * H), jnp.float32)
    bias = jnp.zeros((1, 8 * H), jnp.float32)
    src_order = (0, 1, 3, 2)                      # dest i,f,o,g -> src idx
    for k, s in enumerate(src_order):
        cf = slice(2 * k * H, (2 * k + 1) * H)
        cb = slice((2 * k + 1) * H, (2 * k + 2) * H)
        src = slice(s * H, (s + 1) * H)
        Wx = Wx.at[0:E, cf].set(wih_f_t[:, src])
        Wx = Wx.at[E:2 * E, cb].set(wih_b_t[:, src])
        Wh = Wh.at[0:H, cf].set(whh_f_t[:, src])
        Wh = Wh.at[H:2 * H, cb].set(whh_b_t[:, src])
        bias = bias.at[0, cf].set(b_f[0, src])
        bias = bias.at[0, cb].set(b_b[0, src])
    return Wx, Wh, bias


# ----------------------------------------------------------------------------
# Multi-head self-attention kernel: grid over batch, lane-dense (T-on-lanes)
# softmax, lane-dense (NH*2H = 128) output row.
# ----------------------------------------------------------------------------
def attn_kernel(jT_ref, j_ref, mask_ref, w1T_ref, b1_ref, w2T_ref, b2_ref,
                out_ref, *, num_heads):
    jT = jT_ref[0]                                           # (2H, T) bf16
    h1 = jnp.tanh(
        jnp.dot(w1T_ref[...], jT, preferred_element_type=jnp.float32)
        + b1_ref[...])                                       # (NH*H, T) f32
    logits = (jnp.dot(w2T_ref[...], h1, preferred_element_type=jnp.float32)
              + b2_ref[...] + mask_ref[0])                   # (NH, T), T lanes

    m = jnp.max(logits, axis=-1, keepdims=True)              # lane reduce
    e = jnp.exp(logits - m)                                  # masked -> 0
    denom = jnp.sum(e, axis=-1, keepdims=True)
    probs = e * pl.reciprocal(denom, approx=True)            # (NH, T)

    joined = j_ref[0]                                        # (T, 2H) f32
    mean = jnp.dot(probs, joined,
                   preferred_element_type=jnp.float32)       # (NH, 2H)
    row = jnp.concatenate([mean[j:j + 1, :] for j in range(num_heads)],
                          axis=-1)                           # (1, NH*2H)
    out_ref[0] = row


def run_attention(joined_T, joined, mask_bias, w1T, b1col, w2T, b2col,
                  num_heads):
    """joined_T: (B, 2H, T) bf16; joined: (B, T, 2H) f32; mask: (B, 1, T) f32.
    Returns (B, NH*2H) f32."""
    B, T, E2 = joined.shape
    out = pl.pallas_call(
        functools.partial(attn_kernel, num_heads=num_heads),
        out_shape=jax.ShapeDtypeStruct((B, 1, num_heads * E2), jnp.float32),
        grid=(B,),
        in_specs=[
            pl.BlockSpec((1, E2, T), lambda b: (b, 0, 0)),
            pl.BlockSpec((1, T, E2), lambda b: (b, 0, 0)),
            pl.BlockSpec((1, 1, T), lambda b: (b, 0, 0)),
            pl.BlockSpec(w1T.shape, lambda b: (0, 0)),
            pl.BlockSpec(b1col.shape, lambda b: (0, 0)),
            pl.BlockSpec(w2T.shape, lambda b: (0, 0)),
            pl.BlockSpec(b2col.shape, lambda b: (0, 0)),
        ],
        out_specs=pl.BlockSpec((1, 1, num_heads * E2), lambda b: (b, 0, 0)),
        compiler_params=pltpu.CompilerParams(
            dimension_semantics=("parallel",),
            vmem_limit_bytes=32 * 1024 * 1024),
    )(joined_T, joined, mask_bias, w1T, b1col, w2T, b2col)
    return out.reshape(B, num_heads * E2)


# ----------------------------------------------------------------------------
# One-time parameter preparation (fused/stacked weights, bf16 matmul operands)
# ----------------------------------------------------------------------------
def prepare_params(params):
    wx, wh, bias = build_fused_lstm_weights(
        params["f_wih_t"], params["f_whh_t"], params["f_b"],
        params["b_wih_t"], params["b_whh_t"], params["b_b"])
    H = params["f_whh_t"].shape[0]
    NH = params["w1"].shape[0]
    w1T = jnp.transpose(params["w1"], (0, 2, 1)).reshape(NH * H, 2 * H)
    b1col = params["b1"].reshape(NH * H, 1)
    w2flat = params["w2"].reshape(NH, H)
    w2T = (jnp.eye(NH, dtype=jnp.float32)[:, :, None]
           * w2flat[:, None, :]).reshape(NH, NH * H)          # block-diag
    b2col = params["b2"].reshape(NH, 1)
    return {
        "embedding": params["embedding"],
        "wx": wx.astype(jnp.bfloat16),
        "wh": wh.astype(jnp.bfloat16),
        "b": bias,                                            # f32
        "w1T": w1T.astype(jnp.bfloat16),
        "b1col": b1col,
        "w2T": w2T,
        "b2col": b2col,
        "hidden_dim": H,
        "num_heads": NH,
    }


# ----------------------------------------------------------------------------
# Full module forward (glue in plain JAX, hot paths in Pallas)
# ----------------------------------------------------------------------------
def text_self_attention_forward(prep, tokens_full, lengths):
    """tokens_full: (B, T) int32, row i valid for lengths[i] positions.
    Returns (B, num_heads * 2 * hidden_dim)."""
    B, T = tokens_full.shape
    H = prep["hidden_dim"]
    NH = prep["num_heads"]

    pos = jnp.arange(T)[None, :]
    valid = pos < lengths[:, None]

    # Emulate the module's padded forward / reversed token batches.
    tokens_f = jnp.where(valid, tokens_full, 0)
    rev_idx = jnp.clip(lengths[:, None] - 1 - pos, 0, T - 1)
    tokens_b = jnp.where(valid,
                         jnp.take_along_axis(tokens_full, rev_idx, axis=1), 0)

    emb = prep["embedding"]
    emb_f = jnp.take(emb, tokens_f.T, axis=0)                 # (T, B, E)
    emb_b = jnp.take(emb, tokens_b.T, axis=0)                 # (T, B, E)
    x_cat = jnp.concatenate([emb_f, emb_b], axis=-1).astype(jnp.bfloat16)

    # Pad batch to a full sublane tile, time to a TBLK multiple; flatten.
    TBLK = 64 if T >= 64 else max(8, ((T + 7) // 8) * 8)
    Bp = ((B + 7) // 8) * 8
    Tp = ((T + TBLK - 1) // TBLK) * TBLK
    x_pad = jnp.pad(x_cat, ((0, Tp - T), (0, Bp - B), (0, 0)))
    x_flat = x_pad.reshape(Tp * Bp, -1)                       # (Tp*Bp, 2E)

    # Fused bidirectional LSTM (single Pallas kernel).
    out = run_bilstm(x_flat, prep["wx"], prep["wh"], prep["b"], H, TBLK, Bp)
    out = out[:T, :B]                                         # (T, B, 2H)

    out_f = jnp.transpose(out[:, :, :H], (1, 0, 2))           # (B, T, H)
    out_b = jnp.transpose(out[:, :, H:], (1, 0, 2))           # (B, T, H)
    # Re-align backward states: b_states[t] = out_b[:, len-1-t]
    b_rev = jnp.take_along_axis(out_b, rev_idx[:, :, None], axis=1)
    joined = jnp.concatenate([out_f, b_rev], axis=-1)         # (B, T, 2H) f32
    joined_T = jnp.transpose(joined, (0, 2, 1)).astype(jnp.bfloat16)

    # Additive softmax mask, kept in f32 (bf16 would saturate).
    mask_bias = jnp.where(valid, 0.0, -1e30).astype(jnp.float32)[:, None, :]

    return run_attention(joined_T, joined, mask_bias,
                         prep["w1T"], prep["b1col"], prep["w2T"],
                         prep["b2col"], NH)


# ----------------------------------------------------------------------------
# Plain-JAX reference (same math) for validation
# ----------------------------------------------------------------------------
def lstm_ref(x, wih_t, whh_t, b):
    T, B, E = x.shape
    H = whh_t.shape[0]

    def step(carry, x_t):
        h, c = carry
        gates = x_t @ wih_t + h @ whh_t + b[0]
        i, f, g, o = jnp.split(gates, 4, axis=-1)
        i, f, o = jax.nn.sigmoid(i), jax.nn.sigmoid(f), jax.nn.sigmoid(o)
        g = jnp.tanh(g)
        c = f * c + i * g
        h = o * jnp.tanh(c)
        return (h, c), h

    _, hs = jax.lax.scan(step, (jnp.zeros((B, H)), jnp.zeros((B, H))), x)
    return hs


def forward_ref(params, tokens_full, lengths):
    B, T = tokens_full.shape
    pos = jnp.arange(T)[None, :]
    valid = pos < lengths[:, None]
    tokens_f = jnp.where(valid, tokens_full, 0)
    rev_idx = jnp.clip(lengths[:, None] - 1 - pos, 0, T - 1)
    tokens_b = jnp.where(valid,
                         jnp.take_along_axis(tokens_full, rev_idx, axis=1), 0)
    emb = params["embedding"]
    emb_f = jnp.take(emb, tokens_f.T, axis=0)
    emb_b = jnp.take(emb, tokens_b.T, axis=0)
    out_f = lstm_ref(emb_f, params["f_wih_t"], params["f_whh_t"], params["f_b"])
    out_b = lstm_ref(emb_b, params["b_wih_t"], params["b_whh_t"], params["b_b"])
    out_f = jnp.transpose(out_f, (1, 0, 2))
    out_b = jnp.transpose(out_b, (1, 0, 2))
    b_rev = jnp.take_along_axis(out_b, rev_idx[:, :, None], axis=1)
    joined = jnp.concatenate([out_f, b_rev], axis=-1)

    NH = params["w1"].shape[0]
    outs = []
    for b_i in range(B):
        mask = (jnp.arange(T) < lengths[b_i])[:, None]
        heads = []
        for j in range(NH):
            h1 = jnp.tanh(joined[b_i] @ params["w1"][j] + params["b1"][j])
            logits = h1 @ params["w2"][j] + params["b2"][j]
            logits = jnp.where(mask, logits, -1e30)
            probs = jax.nn.softmax(logits, axis=0)
            probs = jnp.where(mask, probs, 0.0)
            heads.append(jnp.sum(probs * joined[b_i], axis=0))
        outs.append(jnp.concatenate(heads))
    return jnp.stack(outs)


# ----------------------------------------------------------------------------
# Deterministic parameter construction (synthetic weights, no checkpoint)
# ----------------------------------------------------------------------------
def make_params(key, vocab_size, emb_dim, hidden_dim, num_heads):
    ks = jax.random.split(key, 12)
    H, E = hidden_dim, emb_dim
    s_h = 1.0 / np.sqrt(H)

    def unif(k, shape, scale):
        return jax.random.uniform(k, shape, jnp.float32, -scale, scale)

    return {
        "embedding": jax.random.normal(ks[0], (vocab_size, E), jnp.float32) * 0.1,
        # forward LSTM (weights pre-transposed, gate order i,f,g,o)
        "f_wih_t": unif(ks[1], (E, 4 * H), s_h),
        "f_whh_t": unif(ks[2], (H, 4 * H), s_h),
        "f_b": unif(ks[3], (1, 4 * H), s_h),
        # backward LSTM
        "b_wih_t": unif(ks[4], (E, 4 * H), s_h),
        "b_whh_t": unif(ks[5], (H, 4 * H), s_h),
        "b_b": unif(ks[6], (1, 4 * H), s_h),
        # attention heads: key_layers_1 (2H -> H), key_layers_2 (H -> 1)
        "w1": unif(ks[7], (num_heads, 2 * H, H), np.sqrt(6.0 / (2 * H))),
        "b1": jnp.zeros((num_heads, 1, H), jnp.float32),
        "w2": unif(ks[8], (num_heads, H, 1), np.sqrt(6.0 / H)),
        "b2": jnp.zeros((num_heads, 1, 1), jnp.float32),
    }


if __name__ == "__main__":
    emb_dim, hidden_dim, vocab_size, num_heads = 32, 32, 20, 2
    B, T = 2, 8

    key = jax.random.PRNGKey(0)
    k_tok, k_par = jax.random.split(key)

    # Sequences sorted descending by length, padded to T.
    lengths = jnp.array([8, 5], dtype=jnp.int32)
    tokens_full = jax.random.randint(k_tok, (B, T), 1, vocab_size,
                                     dtype=jnp.int32)

    params = make_params(k_par, vocab_size, emb_dim, hidden_dim, num_heads)
    prep = prepare_params(params)                 # one-time weight fusion

    out = text_self_attention_forward(prep, tokens_full, lengths)
    out = jax.block_until_ready(out)
    assert out.shape == (B, num_heads * 2 * hidden_dim)

    ref = jax.block_until_ready(forward_ref(params, tokens_full, lengths))
    # Tolerance accounts for bf16 matmul operands + approx reciprocal.
    np.testing.assert_allclose(np.asarray(out), np.asarray(ref),
                               rtol=2e-2, atol=2e-2)

    print("KERNEL_OK")
</pallas_src>

<mosaic_0001>
module attributes {stable_mosaic.version = 11 : i64} {
  func.func @bilstm_kernel(%arg0: i32, %arg1: memref<64x64xbf16, #tpu.memory_space<vmem>>, %arg2: memref<64x256xbf16, #tpu.memory_space<vmem>>, %arg3: memref<64x256xbf16, #tpu.memory_space<vmem>>, %arg4: memref<1x256xf32, #tpu.memory_space<vmem>>, %arg5: memref<64x64xf32, #tpu.memory_space<vmem>>, %arg6: memref<64x256xf32, #tpu.memory_space<vmem>>, %arg7: memref<8x64xf32, #tpu.memory_space<vmem>>, %arg8: memref<8x64xf32, #tpu.memory_space<vmem>>) attributes {dimension_semantics = [#tpu.dimension_semantics<arbitrary>], iteration_bounds = array<i64: 1>, scalar_prefetch = 0 : i64, scratch_operands = 3 : i64, tpu.core_type = #tpu.core_type<tc>, window_params = [{transform_indices = @transform_0, window_bounds = array<i64: 64, 64>}, {pipeline_mode = #tpu.pipeline_mode<synchronous>, transform_indices = @transform_1, window_bounds = array<i64: 64, 256>}, {pipeline_mode = #tpu.pipeline_mode<synchronous>, transform_indices = @transform_2, window_bounds = array<i64: 64, 256>}, {pipeline_mode = #tpu.pipeline_mode<synchronous>, transform_indices = @transform_3, window_bounds = array<i64: 1, 256>}, {transform_indices = @transform_4, window_bounds = array<i64: 64, 64>}]} {
    %c0_i32 = arith.constant 0 : i32
    %0 = arith.cmpi eq, %arg0, %c0_i32 : i32
    %1 = arith.extui %0 : i1 to i32
    %c0_i32_0 = arith.constant 0 : i32
    %2 = arith.cmpi ne, %1, %c0_i32_0 : i32
    scf.if %2 {
      %cst_61 = arith.constant 0.000000e+00 : f32
      %225 = vector.broadcast %cst_61 : f32 to vector<8x64xf32>
      %c0_62 = arith.constant 0 : index
      %c0_63 = arith.constant 0 : index
      %226 = vector.load %arg7[%c0_62, %c0_63] : memref<8x64xf32, #tpu.memory_space<vmem>>, vector<8x64xf32>
      tpu.vector_store %arg7[%c0_62, %c0_63], %225 {strides = array<i32>} : memref<8x64xf32, #tpu.memory_space<vmem>>, vector<8x64xf32>,
      %cst_64 = arith.constant 0.000000e+00 : f32
      %227 = vector.broadcast %cst_64 : f32 to vector<8x64xf32>
      %c0_65 = arith.constant 0 : index
      %c0_66 = arith.constant 0 : index
      %228 = vector.load %arg8[%c0_65, %c0_66] : memref<8x64xf32, #tpu.memory_space<vmem>>, vector<8x64xf32>
      tpu.vector_store %arg8[%c0_65, %c0_66], %227 {strides = array<i32>} : memref<8x64xf32, #tpu.memory_space<vmem>>, vector<8x64xf32>,
    } else {
    }
    %c0 = arith.constant 0 : index
    %c0_1 = arith.constant 0 : index
    %3 = vector.load %arg1[%c0, %c0_1] : memref<64x64xbf16, #tpu.memory_space<vmem>>, vector<64x64xbf16>
    %c0_2 = arith.constant 0 : index
    %c0_3 = arith.constant 0 : index
    %4 = vector.load %arg2[%c0_2, %c0_3] : memref<64x256xbf16, #tpu.memory_space<vmem>>, vector<64x256xbf16>
    %cst = arith.constant dense<0.000000e+00> : vector<64x256xf32>
    %5 = tpu.matmul %3, %4, %cst {dimension_numbers = #tpu.dot_dimension_numbers<[1], [0], [0], [1], [0, 0, 1, 1], [], []>} : vector<64x64xbf16>, vector<64x256xbf16>, vector<64x256xf32> -> vector<64x256xf32>
    %c0_4 = arith.constant 0 : index
    %c0_5 = arith.constant 0 : index
    %6 = vector.load %arg4[%c0_4, %c0_5] : memref<1x256xf32, #tpu.memory_space<vmem>>, vector<1x256xf32>
    %7 = vector.broadcast %6 : vector<1x256xf32> to vector<64x256xf32>
    %8 = arith.addf %5, %7 : vector<64x256xf32>
    %c0_6 = arith.constant 0 : index
    %c0_7 = arith.constant 0 : index
    %9 = vector.load %arg6[%c0_6, %c0_7] : memref<64x256xf32, #tpu.memory_space<vmem>>, vector<64x256xf32>
    tpu.vector_store %arg6[%c0_6, %c0_7], %8 {strides = array<i32>} : memref<64x256xf32, #tpu.memory_space<vmem>>, vector<64x256xf32>,
    %c0_8 = arith.constant 0 : index
    %c0_9 = arith.constant 0 : index
    %10 = vector.load %arg3[%c0_8, %c0_9] : memref<64x256xbf16, #tpu.memory_space<vmem>>, vector<64x256xbf16>
    %c0_10 = arith.constant 0 : index
    %c0_11 = arith.constant 0 : index
    %11 = vector.load %arg7[%c0_10, %c0_11] : memref<8x64xf32, #tpu.memory_space<vmem>>, vector<8x64xf32>
    %c0_12 = arith.constant 0 : index
    %c0_13 = arith.constant 0 : index
    %12 = vector.load %arg8[%c0_12, %c0_13] : memref<8x64xf32, #tpu.memory_space<vmem>>, vector<8x64xf32>
    %c0_i32_14 = arith.constant 0 : i32
    %c8_i32 = arith.constant 8 : i32
    %13 = arith.muli %c0_i32_14, %c8_i32 : i32
    %14 = tpu.assume_multiple %13, 8 : i32
    %c0_i32_15 = arith.constant 0 : i32
    %15 = arith.addi %14, %c0_i32_15 : i32
    %c8_i32_16 = arith.constant 8 : i32
    %16 = arith.muli %15, %c8_i32_16 : i32
    %17 = tpu.assume_multiple %16, 8 : i32
    %18 = arith.index_cast %17 : i32 to index
    %c0_17 = arith.constant 0 : index
    %19 = vector.load %arg6[%18, %c0_17] : memref<64x256xf32, #tpu.memory_space<vmem>>, vector<8x256xf32>
    %20 = arith.truncf %11 : vector<8x64xf32> to vector<8x64xbf16>
    %cst_18 = arith.constant dense<0.000000e+00> : vector<8x256xf32>
    %21 = tpu.matmul %20, %10, %cst_18 {dimension_numbers = #tpu.dot_dimension_numbers<[1], [0], [0], [1], [0, 0, 1, 1], [], []>} : vector<8x64xbf16>, vector<64x256xbf16>, vector<8x256xf32> -> vector<8x256xf32>
    %22 = arith.addf %19, %21 : vector<8x256xf32>
    %23 = vector.extract_strided_slice %22 {offsets = [0, 0], sizes = [8, 192], strides = [1, 1]} : vector<8x256xf32> to vector<8x192xf32>
    %24 = arith.negf %23 : vector<8x192xf32>
    %25 = math.exp %24 : vector<8x192xf32>
    %cst_19 = arith.constant 1.000000e+00 : f32
    %26 = vector.broadcast %cst_19 : f32 to vector<8x192xf32>
    %27 = arith.addf %26, %25 : vector<8x192xf32>
    %28 = arith.divf %26, %27 : vector<8x192xf32>
    %29 = vector.extract_strided_slice %28 {offsets = [0, 0], sizes = [8, 64], strides = [1, 1]} : vector<8x192xf32> to vector<8x64xf32>
    %30 = vector.extract_strided_slice %28 {offsets = [0, 64], sizes = [8, 64], strides = [1, 1]} : vector<8x192xf32> to vector<8x64xf32>
    %31 = vector.extract_strided_slice %28 {offsets = [0, 128], sizes = [8, 64], strides = [1, 1]} : vector<8x192xf32> to vector<8x64xf32>
    %32 = vector.extract_strided_slice %22 {offsets = [0, 192], sizes = [8, 64], strides = [1, 1]} : vector<8x256xf32> to vector<8x64xf32>
    %33 = math.tanh %32 : vector<8x64xf32>
    %34 = arith.mulf %30, %12 : vector<8x64xf32>
    %35 = arith.mulf %29, %33 : vector<8x64xf32>
    %36 = arith.addf %34, %35 : vector<8x64xf32>
    %37 = math.tanh %36 : vector<8x64xf32>
    %38 = arith.mulf %31, %37 : vector<8x64xf32>
    %39 = arith.index_cast %17 : i32 to index
    %c0_20 = arith.constant 0 : index
    %40 = vector.load %arg5[%39, %c0_20] : memref<64x64xf32, #tpu.memory_space<vmem>>, vector<8x64xf32>
    tpu.vector_store %arg5[%39, %c0_20], %38 {strides = array<i32>} : memref<64x64xf32, #tpu.memory_space<vmem>>, vector<8x64xf32>,
    %c1_i32 = arith.constant 1 : i32
    %41 = arith.addi %14, %c1_i32 : i32
    %c8_i32_21 = arith.constant 8 : i32
    %42 = arith.muli %41, %c8_i32_21 : i32
    %43 = tpu.assume_multiple %42, 8 : i32
    %44 = arith.index_cast %43 : i32 to index
    %c0_22 = arith.constant 0 : index
    %45 = vector.load %arg6[%44, %c0_22] : memref<64x256xf32, #tpu.memory_space<vmem>>, vector<8x256xf32>
    %46 = arith.truncf %38 : vector<8x64xf32> to vector<8x64xbf16>
    %cst_23 = arith.constant dense<0.000000e+00> : vector<8x256xf32>
    %47 = tpu.matmul %46, %10, %cst_23 {dimension_numbers = #tpu.dot_dimension_numbers<[1], [0], [0], [1], [0, 0, 1, 1], [], []>} : vector<8x64xbf16>, vector<64x256xbf16>, vector<8x256xf32> -> vector<8x256xf32>
    %48 = arith.addf %45, %47 : vector<8x256xf32>
    %49 = vector.extract_strided_slice %48 {offsets = [0, 0], sizes = [8, 192], strides = [1, 1]} : vector<8x256xf32> to vector<8x192xf32>
    %50 = arith.negf %49 : vector<8x192xf32>
    %51 = math.exp %50 : vector<8x192xf32>
    %cst_24 = arith.constant 1.000000e+00 : f32
    %52 = vector.broadcast %cst_24 : f32 to vector<8x192xf32>
    %53 = arith.addf %52, %51 : vector<8x192xf32>
    %54 = arith.divf %52, %53 : vector<8x192xf32>
    %55 = vector.extract_strided_slice %54 {offsets = [0, 0], sizes = [8, 64], strides = [1, 1]} : vector<8x192xf32> to vector<8x64xf32>
    %56 = vector.extract_strided_slice %54 {offsets = [0, 64], sizes = [8, 64], strides = [1, 1]} : vector<8x192xf32> to vector<8x64xf32>
    %57 = vector.extract_strided_slice %54 {offsets = [0, 128], sizes = [8, 64], strides = [1, 1]} : vector<8x192xf32> to vector<8x64xf32>
    %58 = vector.extract_strided_slice %48 {offsets = [0, 192], sizes = [8, 64], strides = [1, 1]} : vector<8x256xf32> to vector<8x64xf32>
    %59 = math.tanh %58 : vector<8x64xf32>
    %60 = arith.mulf %56, %36 : vector<8x64xf32>
    %61 = arith.mulf %55, %59 : vector<8x64xf32>
    %62 = arith.addf %60, %61 : vector<8x64xf32>
    %63 = math.tanh %62 : vector<8x64xf32>
    %64 = arith.mulf %57, %63 : vector<8x64xf32>
    %65 = arith.index_cast %43 : i32 to index
    %c0_25 = arith.constant 0 : index
    %66 = vector.load %arg5[%65, %c0_25] : memref<64x64xf32, #tpu.memory_space<vmem>>, vector<8x64xf32>
    tpu.vector_store %arg5[%65, %c0_25], %64 {strides = array<i32>} : memref<64x64xf32, #tpu.memory_space<vmem>>, vector<8x64xf32>,
    %c2_i32 = arith.constant 2 : i32
    %67 = arith.addi %14, %c2_i32 : i32
    %c8_i32_26 = arith.constant 8 : i32
    %68 = arith.muli %67, %c8_i32_26 : i32
    %69 = tpu.assume_multiple %68, 8 : i32
    %70 = arith.index_cast %69 : i32 to index
    %c0_27 = arith.constant 0 : index
    %71 = vector.load %arg6[%70, %c0_27] : memref<64x256xf32, #tpu.memory_space<vmem>>, vector<8x256xf32>
    %72 = arith.truncf %64 : vector<8x64xf32> to vector<8x64xbf16>
    %cst_28 = arith.constant dense<0.000000e+00> : vector<8x256xf32>
    %73 = tpu.matmul %72, %10, %cst_28 {dimension_numbers = #tpu.dot_dimension_numbers<[1], [0], [0], [1], [0, 0, 1, 1], [], []>} : vector<8x64xbf16>, vector<64x256xbf16>, vector<8x256xf32> -> vector<8x256xf32>
    %74 = arith.addf %71, %73 : vector<8x256xf32>
    %75 = vector.extract_strided_slice %74 {offsets = [0, 0], sizes = [8, 192], strides = [1, 1]} : vector<8x256xf32> to vector<8x192xf32>
    %76 = arith.negf %75 : vector<8x192xf32>
    %77 = math.exp %76 : vector<8x192xf32>
    %cst_29 = arith.constant 1.000000e+00 : f32
    %78 = vector.broadcast %cst_29 : f32 to vector<8x192xf32>
    %79 = arith.addf %78, %77 : vector<8x192xf32>
    %80 = arith.divf %78, %79 : vector<8x192xf32>
    %81 = vector.extract_strided_slice %80 {offsets = [0, 0], sizes = [8, 64], strides = [1, 1]} : vector<8x192xf32> to vector<8x64xf32>
    %82 = vector.extract_strided_slice %80 {offsets = [0, 64], sizes = [8, 64], strides = [1, 1]} : vector<8x192xf32> to vector<8x64xf32>
    %83 = vector.extract_strided_slice %80 {offsets = [0, 128], sizes = [8, 64], strides = [1, 1]} : vector<8x192xf32> to vector<8x64xf32>
    %84 = vector.extract_strided_slice %74 {offsets = [0, 192], sizes = [8, 64], strides = [1, 1]} : vector<8x256xf32> to vector<8x64xf32>
    %85 = math.tanh %84 : vector<8x64xf32>
    %86 = arith.mulf %82, %62 : vector<8x64xf32>
    %87 = arith.mulf %81, %85 : vector<8x64xf32>
    %88 = arith.addf %86, %87 : vector<8x64xf32>
    %89 = math.tanh %88 : vector<8x64xf32>
    %90 = arith.mulf %83, %89 : vector<8x64xf32>
    %91 = arith.index_cast %69 : i32 to index
    %c0_30 = arith.constant 0 : index
    %92 = vector.load %arg5[%91, %c0_30] : memref<64x64xf32, #tpu.memory_space<vmem>>, vector<8x64xf32>
    tpu.vector_store %arg5[%91, %c0_30], %90 {strides = array<i32>} : memref<64x64xf32, #tpu.memory_space<vmem>>, vector<8x64xf32>,
    %c3_i32 = arith.constant 3 : i32
    %93 = arith.addi %14, %c3_i32 : i32
    %c8_i32_31 = arith.constant 8 : i32
    %94 = arith.muli %93, %c8_i32_31 : i32
    %95 = tpu.assume_multiple %94, 8 : i32
    %96 = arith.index_cast %95 : i32 to index
    %c0_32 = arith.constant 0 : index
    %97 = vector.load %arg6[%96, %c0_32] : memref<64x256xf32, #tpu.memory_space<vmem>>, vector<8x256xf32>
    %98 = arith.truncf %90 : vector<8x64xf32> to vector<8x64xbf16>
    %cst_33 = arith.constant dense<0.000000e+00> : vector<8x256xf32>
    %99 = tpu.matmul %98, %10, %cst_33 {dimension_numbers = #tpu.dot_dimension_numbers<[1], [0], [0], [1], [0, 0, 1, 1], [], []>} : vector<8x64xbf16>, vector<64x256xbf16>, vector<8x256xf32> -> vector<8x256xf32>
    %100 = arith.addf %97, %99 : vector<8x256xf32>
    %101 = vector.extract_strided_slice %100 {offsets = [0, 0], sizes = [8, 192], strides = [1, 1]} : vector<8x256xf32> to vector<8x192xf32>
    %102 = arith.negf %101 : vector<8x192xf32>
    %103 = math.exp %102 : vector<8x192xf32>
    %cst_34 = arith.constant 1.000000e+00 : f32
    %104 = vector.broadcast %cst_34 : f32 to vector<8x192xf32>
    %105 = arith.addf %104, %103 : vector<8x192xf32>
    %106 = arith.divf %104, %105 : vector<8x192xf32>
    %107 = vector.extract_strided_slice %106 {offsets = [0, 0], sizes = [8, 64], strides = [1, 1]} : vector<8x192xf32> to vector<8x64xf32>
    %108 = vector.extract_strided_slice %106 {offsets = [0, 64], sizes = [8, 64], strides = [1, 1]} : vector<8x192xf32> to vector<8x64xf32>
    %109 = vector.extract_strided_slice %106 {offsets = [0, 128], sizes = [8, 64], strides = [1, 1]} : vector<8x192xf32> to vector<8x64xf32>
    %110 = vector.extract_strided_slice %100 {offsets = [0, 192], sizes = [8, 64], strides = [1, 1]} : vector<8x256xf32> to vector<8x64xf32>
    %111 = math.tanh %110 : vector<8x64xf32>
    %112 = arith.mulf %108, %88 : vector<8x64xf32>
    %113 = arith.mulf %107, %111 : vector<8x64xf32>
    %114 = arith.addf %112, %113 : vector<8x64xf32>
    %115 = math.tanh %114 : vector<8x64xf32>
    %116 = arith.mulf %109, %115 : vector<8x64xf32>
    %117 = arith.index_cast %95 : i32 to index
    %c0_35 = arith.constant 0 : index
    %118 = vector.load %arg5[%117, %c0_35] : memref<64x64xf32, #tpu.memory_space<vmem>>, vector<8x64xf32>
    tpu.vector_store %arg5[%117, %c0_35], %116 {strides = array<i32>} : memref<64x64xf32, #tpu.memory_space<vmem>>, vector<8x64xf32>,
    %c4_i32 = arith.constant 4 : i32
    %119 = arith.addi %14, %c4_i32 : i32
    %c8_i32_36 = arith.constant 8 : i32
    %120 = arith.muli %119, %c8_i32_36 : i32
    %121 = tpu.assume_multiple %120, 8 : i32
    %122 = arith.index_cast %121 : i32 to index
    %c0_37 = arith.constant 0 : index
    %123 = vector.load %arg6[%122, %c0_37] : memref<64x256xf32, #tpu.memory_space<vmem>>, vector<8x256xf32>
    %124 = arith.truncf %116 : vector<8x64xf32> to vector<8x64xbf16>
    %cst_38 = arith.constant dense<0.000000e+00> : vector<8x256xf32>
    %125 = tpu.matmul %124, %10, %cst_38 {dimension_numbers = #tpu.dot_dimension_numbers<[1], [0], [0], [1], [0, 0, 1, 1], [], []>} : vector<8x64xbf16>, vector<64x256xbf16>, vector<8x256xf32> -> vector<8x256xf32>
    %126 = arith.addf %123, %125 : vector<8x256xf32>
    %127 = vector.extract_strided_slice %126 {offsets = [0, 0], sizes = [8, 192], strides = [1, 1]} : vector<8x256xf32> to vector<8x192xf32>
    %128 = arith.negf %127 : vector<8x192xf32>
    %129 = math.exp %128 : vector<8x192xf32>
    %cst_39 = arith.constant 1.000000e+00 : f32
    %130 = vector.broadcast %cst_39 : f32 to vector<8x192xf32>
    %131 = arith.addf %130, %129 : vector<8x192xf32>
    %132 = arith.divf %130, %131 : vector<8x192xf32>
    %133 = vector.extract_strided_slice %132 {offsets = [0, 0], sizes = [8, 64], strides = [1, 1]} : vector<8x192xf32> to vector<8x64xf32>
    %134 = vector.extract_strided_slice %132 {offsets = [0, 64], sizes = [8, 64], strides = [1, 1]} : vector<8x192xf32> to vector<8x64xf32>
    %135 = vector.extract_strided_slice %132 {offsets = [0, 128], sizes = [8, 64], strides = [1, 1]} : vector<8x192xf32> to vector<8x64xf32>
    %136 = vector.extract_strided_slice %126 {offsets = [0, 192], sizes = [8, 64], strides = [1, 1]} : vector<8x256xf32> to vector<8x64xf32>
    %137 = math.tanh %136 : vector<8x64xf32>
    %138 = arith.mulf %134, %114 : vector<8x64xf32>
    %139 = arith.mulf %133, %137 : vector<8x64xf32>
    %140 = arith.addf %138, %139 : vector<8x64xf32>
    %141 = math.tanh %140 : vector<8x64xf32>
    %142 = arith.mulf %135, %141 : vector<8x64xf32>
    %143 = arith.index_cast %121 : i32 to index
    %c0_40 = arith.constant 0 : index
    %144 = vector.load %arg5[%143, %c0_40] : memref<64x64xf32, #tpu.memory_space<vmem>>, vector<8x64xf32>
    tpu.vector_store %arg5[%143, %c0_40], %142 {strides = array<i32>} : memref<64x64xf32, #tpu.memory_space<vmem>>, vector<8x64xf32>,
    %c5_i32 = arith.constant 5 : i32
    %145 = arith.addi %14, %c5_i32 : i32
    %c8_i32_41 = arith.constant 8 : i32
    %146 = arith.muli %145, %c8_i32_41 : i32
    %147 = tpu.assume_multiple %146, 8 : i32
    %148 = arith.index_cast %147 : i32 to index
    %c0_42 = arith.constant 0 : index
    %149 = vector.load %arg6[%148, %c0_42] : memref<64x256xf32, #tpu.memory_space<vmem>>, vector<8x256xf32>
    %150 = arith.truncf %142 : vector<8x64xf32> to vector<8x64xbf16>
    %cst_43 = arith.constant dense<0.000000e+00> : vector<8x256xf32>
    %151 = tpu.matmul %150, %10, %cst_43 {dimension_numbers = #tpu.dot_dimension_numbers<[1], [0], [0], [1], [0, 0, 1, 1], [], []>} : vector<8x64xbf16>, vector<64x256xbf16>, vector<8x256xf32> -> vector<8x256xf32>
    %152 = arith.addf %149, %151 : vector<8x256xf32>
    %153 = vector.extract_strided_slice %152 {offsets = [0, 0], sizes = [8, 192], strides = [1, 1]} : vector<8x256xf32> to vector<8x192xf32>
    %154 = arith.negf %153 : vector<8x192xf32>
    %155 = math.exp %154 : vector<8x192xf32>
    %cst_44 = arith.constant 1.000000e+00 : f32
    %156 = vector.broadcast %cst_44 : f32 to vector<8x192xf32>
    %157 = arith.addf %156, %155 : vector<8x192xf32>
    %158 = arith.divf %156, %157 : vector<8x192xf32>
    %159 = vector.extract_strided_slice %158 {offsets = [0, 0], sizes = [8, 64], strides = [1, 1]} : vector<8x192xf32> to vector<8x64xf32>
    %160 = vector.extract_strided_slice %158 {offsets = [0, 64], sizes = [8, 64], strides = [1, 1]} : vector<8x192xf32> to vector<8x64xf32>
    %161 = vector.extract_strided_slice %158 {offsets = [0, 128], sizes = [8, 64], strides = [1, 1]} : vector<8x192xf32> to vector<8x64xf32>
    %162 = vector.extract_strided_slice %152 {offsets = [0, 192], sizes = [8, 64], strides = [1, 1]} : vector<8x256xf32> to vector<8x64xf32>
    %163 = math.tanh %162 : vector<8x64xf32>
    %164 = arith.mulf %160, %140 : vector<8x64xf32>
    %165 = arith.mulf %159, %163 : vector<8x64xf32>
    %166 = arith.addf %164, %165 : vector<8x64xf32>
    %167 = math.tanh %166 : vector<8x64xf32>
    %168 = arith.mulf %161, %167 : vector<8x64xf32>
    %169 = arith.index_cast %147 : i32 to index
    %c0_45 = arith.constant 0 : index
    %170 = vector.load %arg5[%169, %c0_45] : memref<64x64xf32, #tpu.memory_space<vmem>>, vector<8x64xf32>
    tpu.vector_store %arg5[%169, %c0_45], %168 {strides = array<i32>} : memref<64x64xf32, #tpu.memory_space<vmem>>, vector<8x64xf32>,
    %c6_i32 = arith.constant 6 : i32
    %171 = arith.addi %14, %c6_i32 : i32
    %c8_i32_46 = arith.constant 8 : i32
    %172 = arith.muli %171, %c8_i32_46 : i32
    %173 = tpu.assume_multiple %172, 8 : i32
    %174 = arith.index_cast %173 : i32 to index
    %c0_47 = arith.constant 0 : index
    %175 = vector.load %arg6[%174, %c0_47] : memref<64x256xf32, #tpu.memory_space<vmem>>, vector<8x256xf32>
    %176 = arith.truncf %168 : vector<8x64xf32> to vector<8x64xbf16>
    %cst_48 = arith.constant dense<0.000000e+00> : vector<8x256xf32>
    %177 = tpu.matmul %176, %10, %cst_48 {dimension_numbers = #tpu.dot_dimension_numbers<[1], [0], [0], [1], [0, 0, 1, 1], [], []>} : vector<8x64xbf16>, vector<64x256xbf16>, vector<8x256xf32> -> vector<8x256xf32>
    %178 = arith.addf %175, %177 : vector<8x256xf32>
    %179 = vector.extract_strided_slice %178 {offsets = [0, 0], sizes = [8, 192], strides = [1, 1]} : vector<8x256xf32> to vector<8x192xf32>
    %180 = arith.negf %179 : vector<8x192xf32>
    %181 = math.exp %180 : vector<8x192xf32>
    %cst_49 = arith.constant 1.000000e+00 : f32
    %182 = vector.broadcast %cst_49 : f32 to vector<8x192xf32>
    %183 = arith.addf %182, %181 : vector<8x192xf32>
    %184 = arith.divf %182, %183 : vector<8x192xf32>
    %185 = vector.extract_strided_slice %184 {offsets = [0, 0], sizes = [8, 64], strides = [1, 1]} : vector<8x192xf32> to vector<8x64xf32>
    %186 = vector.extract_strided_slice %184 {offsets = [0, 64], sizes = [8, 64], strides = [1, 1]} : vector<8x192xf32> to vector<8x64xf32>
    %187 = vector.extract_strided_slice %184 {offsets = [0, 128], sizes = [8, 64], strides = [1, 1]} : vector<8x192xf32> to vector<8x64xf32>
    %188 = vector.extract_strided_slice %178 {offsets = [0, 192], sizes = [8, 64], strides = [1, 1]} : vector<8x256xf32> to vector<8x64xf32>
    %189 = math.tanh %188 : vector<8x64xf32>
    %190 = arith.mulf %186, %166 : vector<8x64xf32>
    %191 = arith.mulf %185, %189 : vector<8x64xf32>
    %192 = arith.addf %190, %191 : vector<8x64xf32>
    %193 = math.tanh %192 : vector<8x64xf32>
    %194 = arith.mulf %187, %193 : vector<8x64xf32>
    %195 = arith.index_cast %173 : i32 to index
    %c0_50 = arith.constant 0 : index
    %196 = vector.load %arg5[%195, %c0_50] : memref<64x64xf32, #tpu.memory_space<vmem>>, vector<8x64xf32>
    tpu.vector_store %arg5[%195, %c0_50], %194 {strides = array<i32>} : memref<64x64xf32, #tpu.memory_space<vmem>>, vector<8x64xf32>,
    %c7_i32 = arith.constant 7 : i32
    %197 = arith.addi %14, %c7_i32 : i32
    %c8_i32_51 = arith.constant 8 : i32
    %198 = arith.muli %197, %c8_i32_51 : i32
    %199 = tpu.assume_multiple %198, 8 : i32
    %200 = arith.index_cast %199 : i32 to index
    %c0_52 = arith.constant 0 : index
    %201 = vector.load %arg6[%200, %c0_52] : memref<64x256xf32, #tpu.memory_space<vmem>>, vector<8x256xf32>
    %202 = arith.truncf %194 : vector<8x64xf32> to vector<8x64xbf16>
    %cst_53 = arith.constant dense<0.000000e+00> : vector<8x256xf32>
    %203 = tpu.matmul %202, %10, %cst_53 {dimension_numbers = #tpu.dot_dimension_numbers<[1], [0], [0], [1], [0, 0, 1, 1], [], []>} : vector<8x64xbf16>, vector<64x256xbf16>, vector<8x256xf32> -> vector<8x256xf32>
    %204 = arith.addf %201, %203 : vector<8x256xf32>
    %205 = vector.extract_strided_slice %204 {offsets = [0, 0], sizes = [8, 192], strides = [1, 1]} : vector<8x256xf32> to vector<8x192xf32>
    %206 = arith.negf %205 : vector<8x192xf32>
    %207 = math.exp %206 : vector<8x192xf32>
    %cst_54 = arith.constant 1.000000e+00 : f32
    %208 = vector.broadcast %cst_54 : f32 to vector<8x192xf32>
    %209 = arith.addf %208, %207 : vector<8x192xf32>
    %210 = arith.divf %208, %209 : vector<8x192xf32>
    %211 = vector.extract_strided_slice %210 {offsets = [0, 0], sizes = [8, 64], strides = [1, 1]} : vector<8x192xf32> to vector<8x64xf32>
    %212 = vector.extract_strided_slice %210 {offsets = [0, 64], sizes = [8, 64], strides = [1, 1]} : vector<8x192xf32> to vector<8x64xf32>
    %213 = vector.extract_strided_slice %210 {offsets = [0, 128], sizes = [8, 64], strides = [1, 1]} : vector<8x192xf32> to vector<8x64xf32>
    %214 = vector.extract_strided_slice %204 {offsets = [0, 192], sizes = [8, 64], strides = [1, 1]} : vector<8x256xf32> to vector<8x64xf32>
    %215 = math.tanh %214 : vector<8x64xf32>
    %216 = arith.mulf %212, %192 : vector<8x64xf32>
    %217 = arith.mulf %211, %215 : vector<8x64xf32>
    %218 = arith.addf %216, %217 : vector<8x64xf32>
    %219 = math.tanh %218 : vector<8x64xf32>
    %220 = arith.mulf %213, %219 : vector<8x64xf32>
    %221 = arith.index_cast %199 : i32 to index
    %c0_55 = arith.constant 0 : index
    %222 = vector.load %arg5[%221, %c0_55] : memref<64x64xf32, #tpu.memory_space<vmem>>, vector<8x64xf32>
    tpu.vector_store %arg5[%221, %c0_55], %220 {strides = array<i32>} : memref<64x64xf32, #tpu.memory_space<vmem>>, vector<8x64xf32>,
    %c1_i32_56 = arith.constant 1 : i32
    %c0_57 = arith.constant 0 : index
    %c0_58 = arith.constant 0 : index
    %223 = vector.load %arg7[%c0_57, %c0_58] : memref<8x64xf32, #tpu.memory_space<vmem>>, vector<8x64xf32>
    tpu.vector_store %arg7[%c0_57, %c0_58], %220 {strides = array<i32>} : memref<8x64xf32, #tpu.memory_space<vmem>>, vector<8x64xf32>,
    %c0_59 = arith.constant 0 : index
    %c0_60 = arith.constant 0 : index
    %224 = vector.load %arg8[%c0_59, %c0_60] : memref<8x64xf32, #tpu.memory_space<vmem>>, vector<8x64xf32>
    tpu.vector_store %arg8[%c0_59, %c0_60], %218 {strides = array<i32>} : memref<8x64xf32, #tpu.memory_space<vmem>>, vector<8x64xf32>,
    return
  }
  func.func @transform_0(%arg0: i32) -> (i32, i32) {
    %c0_i32 = arith.constant 0 : i32
    %c0_i32_0 = arith.constant 0 : i32
    return %arg0, %c0_i32 : i32, i32
  }
  func.func @transform_1(%arg0: i32) -> (i32, i32) {
    %c0_i32 = arith.constant 0 : i32
    %c0_i32_0 = arith.constant 0 : i32
    %c0_i32_1 = arith.constant 0 : i32
    return %c0_i32, %c0_i32_0 : i32, i32
  }
  func.func @transform_2(%arg0: i32) -> (i32, i32) {
    %c0_i32 = arith.constant 0 : i32
    %c0_i32_0 = arith.constant 0 : i32
    %c0_i32_1 = arith.constant 0 : i32
    return %c0_i32, %c0_i32_0 : i32, i32
  }
  func.func @transform_3(%arg0: i32) -> (i32, i32) {
    %c0_i32 = arith.constant 0 : i32
    %c0_i32_0 = arith.constant 0 : i32
    %c0_i32_1 = arith.constant 0 : i32
    return %c0_i32, %c0_i32_0 : i32, i32
  }
  func.func @transform_4(%arg0: i32) -> (i32, i32) {
    %c0_i32 = arith.constant 0 : i32
    %c0_i32_0 = arith.constant 0 : i32
    return %arg0, %c0_i32 : i32, i32
  }
}

</mosaic_0001>

<bundles_post_ra>
// kernel: tpu_custom_call.1
= control target key start
LH: loop header
LB: loop body
LE: loop exit
PB: predicated region body
PF: predicated region fallthrough
CT: control target
= control target key end

     0   :  { %9 = vsyncpa [#allocation6], 0  ;;  %s1626_s0 = inlined_call_operand.hbm [shape: bf16[64,64], index: 0, kind: input, shape index: {}]   ;;  %s1627_s1 = inlined_call_operand.hbm [shape: bf16[64,256], index: 1, kind: input, shape index: {}]   ;;  %s1628_s2 = inlined_call_operand.hbm [shape: bf16[64,256], index: 2, kind: input, shape index: {}]   ;;  %s1629_s3 = inlined_call_operand.vmem [shape: f32[1,256], index: 3, kind: input, shape index: {}]   ;;  %s1630_s4 = inlined_call_operand.hbm [shape: f32[64,64], index: 4, kind: output, shape index: {}]  }
   0x1   :  { %10 = vsyncpa [#allocation9], 0 }
   0x2   :  { %11 = vsyncpa [#allocation7], 0  ;;  %s1337_s15 = smov [#allocation8]   ;;  %s1243_s19 = scalar_lea.hbm %s1627_s1, 1024 }
   0x3   :  { %s29_s16 = sshll.u32 %s1337_s15, 4  ;;  %p1244_p0 = scmp.ne.s32.totalorder %s1627_s1, %s1243_s19  ;;  %s30_s16 = int_to_ptr.vmem [resolvable:$true] %s29_s16 }
   0x4   :  { %p1247_p1 = scmp.lt.u32.totalorder %s1243_s19, %s1627_s1 }
   0x6   :  { %p1249_p2 = pnand %p1247_p1, %p1244_p0 }
   0x8   :  { %1252 = shalt.err (!%p1249_p2)
}
   0x9   :  { %s1253_s24 = scalar_lea.vmem %s30_s16, 1024  ;;  %p1258_p4 = scmp.lt.s32.totalorder %s30_s16, %s30_s16 }
   0xa   :  { %p1254_p3 = scmp.ne.s32.totalorder %s30_s16, %s1253_s24  ;;  %p1259_p5 = scmp.lt.s32.totalorder %s1253_s24, %s1253_s24 }
   0xc   :  { %p1260_p6 = por %p1259_p5, %p1258_p4 }
   0xe   :  { %p1261_p7 = pnand %p1260_p6, %p1254_p3 }
  0x10   :  { %1264 = shalt.err (!%p1261_p7)
}
  0x11   :  { %s1338_s25 = smov 128   ;;  %s1339_s26 = smov 8  }
  0x12   :  { %35 = dma.hbm_to_vmem [thread:$0]  %s1627_s1, 1024, %s30_s16, [#allocation9], %s1338_s25, %s1338_s25, %s1339_s26  }
  0x13   :  { %s1340_s29 = smov [#allocation5]   ;;  %s1265_s7 = scalar_lea.hbm %s1626_s0, 512 }
  0x14   :  { %s17_s30 = sshll.u32 %s1340_s29, 4  ;;  %p1266_p8 = scmp.ne.s32.totalorder %s1626_s0, %s1265_s7  ;;  %s18_s30 = int_to_ptr.vmem [resolvable:$true] %s17_s30 }
  0x15   :  { %p1269_p9 = scmp.lt.u32.totalorder %s1265_s7, %s1626_s0 }
  0x17   :  { %p1271_p10 = pnand %p1269_p9, %p1266_p8 }
  0x19   :  { %1274 = shalt.err (!%p1271_p10)
}
  0x1a   :  { %s1275_s12 = scalar_lea.vmem %s18_s30, 512  ;;  %p1280_p12 = scmp.lt.s32.totalorder %s18_s30, %s18_s30 }
  0x1b   :  { %p1276_p11 = scmp.ne.s32.totalorder %s18_s30, %s1275_s12  ;;  %p1281_p13 = scmp.lt.s32.totalorder %s1275_s12, %s1275_s12 }
  0x1d   :  { %p1282_p0 = por %p1281_p13, %p1280_p12 }
  0x1f   :  { %p1283_p1 = pnand %p1282_p0, %p1276_p11 }
  0x21   :  { %1286 = shalt.err (!%p1283_p1)
}
  0x22   :  { %s1341_s1 = smov 64   ;;  %s1342_s13 = smov 4  }
  0x23   :  { %23 = dma.hbm_to_vmem [thread:$0]  %s1626_s0, 512, %s18_s30, [#allocation6], %s1341_s1, %s1341_s1, %s1342_s13  }
  0x24   :  { %s1343_s16 = smov [#allocation10]   ;;  %s1287_s20 = scalar_lea.hbm %s1628_s2, 1024 }
  0x25   :  { %s41_s17 = sshll.u32 %s1343_s16, 4  ;;  %p1288_p2 = scmp.ne.s32.totalorder %s1628_s2, %s1287_s20  ;;  %s42_s17 = int_to_ptr.vmem [resolvable:$true] %s41_s17 }
  0x26   :  { %p1291_p3 = scmp.lt.u32.totalorder %s1287_s20, %s1628_s2 }
  0x28   :  { %p1293_p4 = pnand %p1291_p3, %p1288_p2 }
  0x2a   :  { %1296 = shalt.err (!%p1293_p4)
}
  0x2b   :  { %s1297_s27 = scalar_lea.vmem %s42_s17, 1024  ;;  %p1302_p6 = scmp.lt.s32.totalorder %s42_s17, %s42_s17 }
  0x2c   :  { %p1298_p5 = scmp.ne.s32.totalorder %s42_s17, %s1297_s27  ;;  %p1303_p7 = scmp.lt.s32.totalorder %s1297_s27, %s1297_s27 }
  0x2e   :  { %p1304_p8 = por %p1303_p7, %p1302_p6 }
  0x30   :  { %p1305_p9 = pnand %p1304_p8, %p1298_p5 }
  0x32   :  { %1308 = shalt.err (!%p1305_p9)
}
  0x33   :  { %47 = dma.hbm_to_vmem [thread:$0]  %s1628_s2, 1024, %s42_s17, [#allocation9], %s1338_s25, %s1338_s25, %s1339_s26  }
  0x34   :  { %1331 = dma.done.wait [#allocation6], 512  }
  0x35   :  { %1332 = vsyncadd [#allocation6], 4294966784 }
  0x36   :  { %1333 = dma.done.wait [#allocation9], 2048  }
  0x37   :  { %1334 = vsyncadd [#allocation9], 4294965248  ;;  %vm64_vm0 = vcmask 523264   ;;  %v1344_v0 = vmov 0   ;;  %v1345_v1 = vmov 0.0   ;;  %v1143_v19 = vld [vmem:[#allocation5] sm:$0xff]   ;;  %v85_v21 = vlaneseq }
  0x38   :  { %200 = vmatprep.mubr.bf16.mxu0 %v1344_v0  ;;  %351 = vmatprep.mubr.bf16.mxu1 %v1344_v0  ;;  %65 = vst.msk [vmem:[#allocation3] sm:$0xff] %vm64_vm0, %v1345_v1  ;;  %66 = vst.msk [vmem:[#allocation4] sm:$0xff] %vm64_vm0, %v1345_v1  ;;  %v1119_v2 = vld [vmem:[#allocation8 + $0x4] ss:$8 sps:$4 sm:$0xff]   ;;  %v1123_v4 = vld [vmem:[#allocation8] ss:$8 sps:$4 sm:$0xff]  }
  0x39   :  { %v1420_v3 = vld [vmem:[#allocation10 + $0x4] ss:$8 sps:$4 sm:$0xff]   ;;  %168 = vmatprep.subr.bf16.mxu0 %v1119_v2  ;;  %v1422_v5 = vld [vmem:[#allocation10] ss:$8 sps:$4 sm:$0xff]   ;;  %v1125_v6 = vld [vmem:[#allocation8 + $0x14] ss:$8 sps:$4 sm:$0xff]  }
  0x3a   :  { %319 = vmatprep.subr.bf16.mxu1 %v1420_v3  ;;  %169 = vmatpush1.bf16.msra.mxu0 %v1123_v4  ;;  %v1426_v7 = vld [vmem:[#allocation10 + $0x14] ss:$8 sps:$4 sm:$0xff]   ;;  %v1129_v8 = vld [vmem:[#allocation8 + $0x10] ss:$8 sps:$4 sm:$0xff]   ;;  %v1131_v10 = vld [vmem:[#allocation8 + $0x24] ss:$8 sps:$4 sm:$0xff]  }
  0x3b   :  { %320 = vmatpush1.bf16.msra.mxu1 %v1422_v5  ;;  %170 = vmatprep.subr.bf16.mxu0 %v1125_v6  ;;  %v1428_v9 = vld [vmem:[#allocation10 + $0x10] ss:$8 sps:$4 sm:$0xff]   ;;  %v1431_v11 = vld [vmem:[#allocation10 + $0x24] ss:$8 sps:$4 sm:$0xff]   ;;  %v1135_v12 = vld [vmem:[#allocation8 + $0x20] ss:$8 sps:$4 sm:$0xff]  }
  0x3c   :  { %321 = vmatprep.subr.bf16.mxu1 %v1426_v7  ;;  %v1433_v13 = vld [vmem:[#allocation10 + $0x20] ss:$8 sps:$4 sm:$0xff]   ;;  %v1137_v14 = vld [vmem:[#allocation8 + $0x34] ss:$8 sps:$4 sm:$0xff]   ;;  %v1141_v16 = vld [vmem:[#allocation8 + $0x30] ss:$8 sps:$4 sm:$0xff]  }
  0x3d   :  { %v1437_v15 = vld [vmem:[#allocation10 + $0x34] ss:$8 sps:$4 sm:$0xff]   ;;  %v1439_v17 = vld [vmem:[#allocation10 + $0x30] ss:$8 sps:$4 sm:$0xff]   ;;  %v86_v22 = vshrl.u32 %v85_v21, 7 }
  0x3e   :  { %171 = vmatpush1.bf16.msra.mxu0 %v1129_v8  ;;  %v83_v24 = vld [vmem:[%s1629_s3] sm:$0x3]  ;;  %s1346_s3 = smov [#allocation11]  }
  0x3f   :  { %322 = vmatpush1.bf16.msra.mxu1 %v1428_v9  ;;  %172 = vmatprep.subr.bf16.mxu0 %v1131_v10  ;;  %v265_v18 = vld [vmem:[#allocation3] sm:$0xff]  ;;  %v87_v23 = vsub.s32 0, %v86_v22  ;;  %v91_v25 = vsub.s32 1, %v86_v22  ;;  %v266_v41 = vld [vmem:[#allocation4] sm:$0xff]  ;;  %s1025_s30 = sshll.u32 %s1346_s3, 4  ;;  %s1026_s30 = int_to_ptr.vmem [resolvable:$true] %s1025_s30 }
  0x40   :  { %323 = vmatprep.subr.bf16.mxu1 %v1431_v11  ;;  %v275_v20 = vpack.c.bf16 %v265_v18, %v265_v18  ;;  %v1145_v21 = vld [vmem:[#allocation5 + $0x10] sm:$0xff]   ;;  %v1146_v22 = vld [vmem:[#allocation5 + $0x18] sm:$0xff]   ;;  %s1309_s5 = scalar_lea.vmem %s1026_s30, 1024  ;;  %p1314_p11 = scmp.lt.s32.totalorder %s1026_s30, %s1026_s30 }
  0x41   :  { %v1469_v26 = vrot.slane %v83_v24, %v87_v23  ;;  %v1471_v27 = vrot.slane %v83_v24, %v91_v25  ;;  %p1310_p10 = scmp.ne.s32.totalorder %s1026_s30, %s1309_s5  ;;  %p1315_p12 = scmp.lt.s32.totalorder %s1309_s5, %s1309_s5 }
  0x42   :  { %173 = vmatpush1.bf16.msra.mxu0 %v1135_v12 }
  0x43   :  { %324 = vmatpush1.bf16.msra.mxu1 %v1433_v13  ;;  %174 = vmatprep.subr.bf16.mxu0 %v1137_v14  ;;  %p1316_p13 = por %p1315_p12, %p1314_p11 }
  0x44   :  { %325 = vmatprep.subr.bf16.mxu1 %v1437_v15 }
  0x45   :  { %p1317_p0 = pnand %p1316_p13, %p1310_p10 }
  0x46   :  { %175 = vmatpush1.bf16.msra.mxu0 %v1141_v16 }
  0x47   :  { %326 = vmatpush1.bf16.msra.mxu1 %v1439_v17  ;;  %499 = vmatprep.subr.bf16.mxu0 %v1420_v3 }
  0x48   :  { %411 = vmatprep.subr.bf16.mxu1 %v1420_v3 }
  0x49   :  { %1073 = vmatmul.mubr.msk.bf16.vlgmr.msra.gmra.mrb[0].mxu0 %vm64_vm0, %v1143_v19 }
  0x4a   :  { %1085 = vmatmul.mubr.msk.bf16.vlgmr.msra.gmra.mrb[0].mxu1 %vm64_vm0, %v275_v20  ;;  %500 = vmatpush1.bf16.msra.mxu0 %v1422_v5  ;;  %v1144_v20 = vld [vmem:[#allocation5 + $0x8] sm:$0xff]  }
  0x4b   :  { %412 = vmatpush1.bf16.msra.mxu1 %v1422_v5  ;;  %443 = vmatprep.mubr.bf16.mxu1 %v1344_v0 }
  0x4c   :  { %413 = vmatprep.subr.bf16.mxu1 %v1426_v7  ;;  %210 = vmatprep.mubr.bf16.mxu0 %v1344_v0 }
  0x4d   :  { %501 = vmatprep.subr.bf16.mxu0 %v1426_v7 }
  0x4e   :  { %502 = vmatpush1.bf16.msra.mxu0 %v1428_v9 }
  0x4f   :  { %414 = vmatpush1.bf16.msra.mxu1 %v1428_v9  ;;  %503 = vmatprep.subr.bf16.mxu0 %v1431_v11 }
  0x50   :  { %415 = vmatprep.subr.bf16.mxu1 %v1431_v11 }
  0x51   :  { %1074 = vmatmul.mubr.msk.bf16.gmra.mrb[4].mxu0 %vm64_vm0, %v1144_v20 }
  0x52   :  { %504 = vmatpush1.bf16.msra.mxu0 %v1433_v13  ;;  %220 = vmatprep.mubr.bf16.mxu0 %v1344_v0 }
  0x53   :  { %416 = vmatpush1.bf16.msra.mxu1 %v1433_v13  ;;  %505 = vmatprep.subr.bf16.mxu0 %v1437_v15 }
  0x54   :  { %417 = vmatprep.subr.bf16.mxu1 %v1437_v15 }
  0x56   :  { %506 = vmatpush1.bf16.msra.mxu0 %v1439_v17 }
  0x57   :  { %418 = vmatpush1.bf16.msra.mxu1 %v1439_v17  ;;  %675 = vmatprep.subr.bf16.mxu0 %v1420_v3 }
  0x58   :  { %587 = vmatprep.subr.bf16.mxu1 %v1420_v3 }
  0x59   :  { %1075 = vmatmul.mubr.msk.bf16.gmra.mrb[8].mxu0 %vm64_vm0, %v1145_v21 }
  0x5a   :  { %230 = vmatprep.mubr.bf16.mxu0 %v1344_v0 }
  0x61   :  { %1076 = vmatmul.mubr.msk.bf16.gmra.mrb[12].mxu0 %vm64_vm0, %v1146_v22 }
  0x62   :  { %531 = vmatprep.mubr.bf16.mxu0 %v1344_v0 }
 0x11c   :  { %v202_v28 = vpop.f32.mrb[0].mxu0 }
 0x11d   :  { %v353_v29 = vpop.f32.mrb[0].mxu1  ;;  %v203_v30 = vadd.f32 %v202_v28, %v1469_v26  ;;  %v204_v31 = vpop.f32.mrb[1].mxu0 }
 0x11e   :  { %v355_v32 = vpop.f32.mrb[1].mxu1  ;;  %v205_v33 = vadd.f32 %v204_v31, %v1471_v27  ;;  %v206_v34 = vpop.f32.mrb[2].mxu0 }
 0x11f   :  { %v357_v35 = vpop.f32.mrb[2].mxu1  ;;  %v360_v36 = vadd.f32 %v353_v29, %v203_v30  ;;  %v208_v37 = vpop.f32.mrb[3].mxu0  ;;  %v207_v60 = vadd.f32 %v206_v34, %v1469_v26 }
 0x120   :  { %v358_v38 = vpop.f32.mrb[3].mxu1  ;;  %v361_v39 = vadd.f32 %v355_v32, %v205_v33  ;;  %v209_v61 = vadd.f32 %v208_v37, %v1471_v27 }
 0x121   :  { %v1086_v42 = vmul.f32 -1.442695, %v360_v36 }
 0x122   :  { %1147 = vtanh.f32 %v361_v39  ;;  %v1087_v53 = vmul.f32 -1.442695, %v361_v39 }
 0x123   :  { %1149 = vpow2.f32 %v1086_v42 }
 0x124   :  { %v212_v30 = vpop.f32.mrb[4].mxu0 }
 0x125   :  { %v214_v31 = vpop.f32.mrb[5].mxu0 }
 0x126   :  { %v1501_v32 = vpop.f32.mrb[6].mxu0 }
 0x127   :  { %v1503_v33 = vpop.f32.mrb[7].mxu0 }
 0x128   :  { %v219_v20 = vadd.f32 %v1503_v33, %v1471_v27 }
 0x12c   :  { %v1148_v40 = vpop.eup %1147  ;;  %v1505_v34 = vpop.f32.mrb[8].mxu0 }
 0x12d   :  { %381 = vrot.lane.b32.xlu0 %v1148_v40, %s1341_s1  ;;  %v1150_v43 = vpop.eup %1149  ;;  %v1507_v35 = vpop.f32.mrb[9].mxu0 }
 0x12e   :  { %v368_v44 = vadd.f32 1.0, %v1150_v43  ;;  %v1509_v36 = vpop.f32.mrb[10].mxu0 }
 0x12f   :  { %v1511_v37 = vpop.f32.mrb[11].mxu0 }
 0x130   :  { %1151 = vrcp.f32 %v368_v44 }
 0x131   :  { %376 = vrot.lane.b32.xlu0 %v266_v41, %s1341_s1 }
 0x134   :  { %v1513_v40 = vpop.f32.mrb[12].mxu0 }
 0x135   :  { %v1515_v41 = vpop.f32.mrb[13].mxu0 }
 0x136   :  { %v1517_v42 = vpop.f32.mrb[14].mxu0 }
 0x137   :  { %v1519_v43 = vpop.f32.mrb[15].mxu0 }
 0x13a   :  { %v1152_v45 = vpop.eup %1151 }
 0x19f   :  { %v382_v46 = vpop.permute.xlu0 %381 }
 0x1a0   :  { %v384_v47 = vmul.f32 %v1152_v45, %v382_v46 }
 0x1a2   :  { %386 = vrot.lane.b32.xlu1 %v384_v47, %s1341_s1 }
 0x1a3   :  { %v377_v48 = vpop.permute.xlu0 %376 }
 0x1a4   :  { %v379_v49 = vmul.f32 %v1152_v45, %v377_v48  ;;  %v213_v48 = vadd.f32 %v212_v30, %v1469_v26 }
 0x214   :  { %v387_v50 = vpop.permute.xlu1 %386 }
 0x215   :  { %v389_v51 = vadd.f32 %v387_v50, %v379_v49  ;;  %v215_v49 = vadd.f32 %v214_v31, %v1471_v27 }
 0x217   :  { %1153 = vtanh.f32 %v389_v51 }
 0x218   :  { %1155 = vpow2.f32 %v1087_v53 }
 0x221   :  { %v1154_v52 = vpop.eup %1153 }
 0x222   :  { %392 = vrot.lane.b32.xlu1 %v1154_v52, %s1341_s1  ;;  %v1156_v54 = vpop.eup %1155 }
 0x223   :  { %v369_v55 = vadd.f32 1.0, %v1156_v54 }
 0x225   :  { %1157 = vrcp.f32 %v369_v55 }
 0x22f   :  { %v1158_v56 = vpop.eup %1157 }
 0x294   :  { %v393_v57 = vpop.permute.xlu1 %392 }
 0x295   :  { %v395_v58 = vmul.f32 %v1158_v56, %v393_v57 }
 0x297   :  { %397 = vst.msk [vmem:[#allocation11] sm:$0xff] %vm64_vm0, %v395_v58  ;;  %v407_v59 = vpack.c.bf16 %v395_v58, %v395_v58 }
 0x299   :  { %1088 = vmatmul.mubr.msk.bf16.vlgmr.msra.gmra.mrb[4].mxu1 %vm64_vm0, %v407_v59 }
 0x29a   :  { %588 = vmatpush1.bf16.msra.mxu1 %v1422_v5  ;;  %619 = vmatprep.mubr.bf16.mxu1 %v1344_v0 }
 0x29b   :  { %589 = vmatprep.subr.bf16.mxu1 %v1426_v7 }
 0x29e   :  { %590 = vmatpush1.bf16.msra.mxu1 %v1428_v9 }
 0x29f   :  { %591 = vmatprep.subr.bf16.mxu1 %v1431_v11 }
 0x2a2   :  { %592 = vmatpush1.bf16.msra.mxu1 %v1433_v13 }
 0x2a3   :  { %593 = vmatprep.subr.bf16.mxu1 %v1437_v15 }
 0x2a6   :  { %594 = vmatpush1.bf16.msra.mxu1 %v1439_v17 }
 0x2a7   :  { %763 = vmatprep.subr.bf16.mxu1 %v1420_v3 }
 0x36c   :  { %v445_v62 = vpop.f32.mrb[4].mxu1 }
 0x36d   :  { %v452_v63 = vadd.f32 %v445_v62, %v207_v60  ;;  %v447_v1 = vpop.f32.mrb[5].mxu1 }
 0x36e   :  { %v453_v2 = vadd.f32 %v447_v1, %v209_v61  ;;  %v449_v4 = vpop.f32.mrb[6].mxu1 }
 0x36f   :  { %v450_v6 = vpop.f32.mrb[7].mxu1  ;;  %v1089_v10 = vmul.f32 -1.442695, %v452_v63 }
 0x370   :  { %1159 = vtanh.f32 %v453_v2  ;;  %v1090_v29 = vmul.f32 -1.442695, %v453_v2 }
 0x371   :  { %1161 = vpow2.f32 %v1089_v10 }
 0x37a   :  { %v1160_v8 = vpop.eup %1159 }
 0x37b   :  { %469 = vrot.lane.b32.xlu0 %v1160_v8, %s1341_s1  ;;  %v1162_v12 = vpop.eup %1161 }
 0x37c   :  { %v460_v14 = vadd.f32 1.0, %v1162_v12 }
 0x37e   :  { %1163 = vrcp.f32 %v460_v14 }
 0x388   :  { %v1164_v16 = vpop.eup %1163 }
 0x389   :  { %v467_v23 = vmul.f32 %v1164_v16, %v389_v51 }
 0x3ed   :  { %v470_v18 = vpop.permute.xlu0 %469 }
 0x3ee   :  { %v472_v19 = vmul.f32 %v1164_v16, %v470_v18 }
 0x3f0   :  { %474 = vrot.lane.b32.xlu1 %v472_v19, %s1341_s1  ;;  %v217_v19 = vadd.f32 %v1501_v32, %v1469_v26 }
 0x462   :  { %v475_v24 = vpop.permute.xlu1 %474 }
 0x463   :  { %v477_v25 = vadd.f32 %v475_v24, %v467_v23 }
 0x465   :  { %1165 = vtanh.f32 %v477_v25 }
 0x466   :  { %1167 = vpow2.f32 %v1090_v29 }
 0x46f   :  { %v1166_v28 = vpop.eup %1165 }
 0x470   :  { %480 = vrot.lane.b32.xlu0 %v1166_v28, %s1341_s1  ;;  %v1168_v38 = vpop.eup %1167 }
 0x471   :  { %v461_v39 = vadd.f32 1.0, %v1168_v38 }
 0x473   :  { %1169 = vrcp.f32 %v461_v39 }
 0x47d   :  { %v1170_v44 = vpop.eup %1169 }
 0x4e2   :  { %v481_v45 = vpop.permute.xlu0 %480 }
 0x4e3   :  { %v483_v46 = vmul.f32 %v1170_v44, %v481_v45 }
 0x4e5   :  { %485 = vst.msk [vmem:[#allocation11 + $0x8] sm:$0xff] %vm64_vm0, %v483_v46  ;;  %v495_v47 = vpack.c.bf16 %v483_v46, %v483_v46 }
 0x4e7   :  { %1091 = vmatmul.mubr.msk.bf16.vlgmr.msra.gmra.mrb[16].mxu0 %vm64_vm0, %v495_v47 }
 0x4e8   :  { %676 = vmatpush1.bf16.msra.mxu0 %v1422_v5  ;;  %707 = vmatprep.mubr.bf16.mxu0 %v1344_v0 }
 0x4e9   :  { %677 = vmatprep.subr.bf16.mxu0 %v1426_v7 }
 0x4ec   :  { %678 = vmatpush1.bf16.msra.mxu0 %v1428_v9 }
 0x4ed   :  { %679 = vmatprep.subr.bf16.mxu0 %v1431_v11 }
 0x4f0   :  { %680 = vmatpush1.bf16.msra.mxu0 %v1433_v13 }
 0x4f1   :  { %681 = vmatprep.subr.bf16.mxu0 %v1437_v15 }
 0x4f4   :  { %682 = vmatpush1.bf16.msra.mxu0 %v1439_v17 }
 0x4f5   :  { %851 = vmatprep.subr.bf16.mxu0 %v1420_v3 }
 0x5ba   :  { %v533_v50 = vpop.f32.mrb[16].mxu0 }
 0x5bb   :  { %v540_v51 = vadd.f32 %v533_v50, %v213_v48  ;;  %v535_v52 = vpop.f32.mrb[17].mxu0 }
 0x5bc   :  { %v541_v53 = vadd.f32 %v535_v52, %v215_v49  ;;  %v537_v54 = vpop.f32.mrb[18].mxu0 }
 0x5bd   :  { %v538_v55 = vpop.f32.mrb[19].mxu0  ;;  %v1092_v57 = vmul.f32 -1.442695, %v540_v51  ;;  %v223_v54 = vadd.f32 %v1505_v34, %v1469_v26 }
 0x5be   :  { %1171 = vtanh.f32 %v541_v53  ;;  %v1093_v6 = vmul.f32 -1.442695, %v541_v53  ;;  %v225_v55 = vadd.f32 %v1507_v35, %v1471_v27 }
 0x5bf   :  { %1173 = vpow2.f32 %v1092_v57 }
 0x5c8   :  { %v1172_v56 = vpop.eup %1171 }
 0x5c9   :  { %557 = vrot.lane.b32.xlu1 %v1172_v56, %s1341_s1  ;;  %v1174_v58 = vpop.eup %1173 }
 0x5ca   :  { %v548_v59 = vadd.f32 1.0, %v1174_v58 }
 0x5cc   :  { %1175 = vrcp.f32 %v548_v59 }
 0x5d6   :  { %v1176_v60 = vpop.eup %1175 }
 0x5d7   :  { %v555_v63 = vmul.f32 %v1176_v60, %v477_v25 }
 0x63b   :  { %v558_v61 = vpop.permute.xlu1 %557 }
 0x63c   :  { %v560_v62 = vmul.f32 %v1176_v60, %v558_v61 }
 0x63e   :  { %562 = vrot.lane.b32.xlu0 %v560_v62, %s1341_s1 }
 0x6b0   :  { %v563_v1 = vpop.permute.xlu0 %562 }
 0x6b1   :  { %v565_v2 = vadd.f32 %v563_v1, %v555_v63 }
 0x6b3   :  { %1177 = vtanh.f32 %v565_v2 }
 0x6b4   :  { %1179 = vpow2.f32 %v1093_v6 }
 0x6bd   :  { %v1178_v4 = vpop.eup %1177 }
 0x6be   :  { %568 = vrot.lane.b32.xlu1 %v1178_v4, %s1341_s1  ;;  %v1180_v8 = vpop.eup %1179 }
 0x6bf   :  { %v549_v10 = vadd.f32 1.0, %v1180_v8 }
 0x6c1   :  { %1181 = vrcp.f32 %v549_v10 }
 0x6cb   :  { %v1182_v12 = vpop.eup %1181 }
 0x730   :  { %v569_v14 = vpop.permute.xlu1 %568 }
 0x731   :  { %v571_v16 = vmul.f32 %v1182_v12, %v569_v14 }
 0x733   :  { %573 = vst.msk [vmem:[#allocation11 + $0x10] sm:$0xff] %vm64_vm0, %v571_v16  ;;  %v583_v18 = vpack.c.bf16 %v571_v16, %v571_v16 }
 0x735   :  { %1094 = vmatmul.mubr.msk.bf16.vlgmr.msra.gmra.mrb[8].mxu1 %vm64_vm0, %v583_v18 }
 0x736   :  { %764 = vmatpush1.bf16.msra.mxu1 %v1422_v5  ;;  %795 = vmatprep.mubr.bf16.mxu1 %v1344_v0 }
 0x737   :  { %765 = vmatprep.subr.bf16.mxu1 %v1426_v7 }
 0x73a   :  { %766 = vmatpush1.bf16.msra.mxu1 %v1428_v9 }
 0x73b   :  { %767 = vmatprep.subr.bf16.mxu1 %v1431_v11 }
 0x73e   :  { %768 = vmatpush1.bf16.msra.mxu1 %v1433_v13 }
 0x73f   :  { %769 = vmatprep.subr.bf16.mxu1 %v1437_v15 }
 0x742   :  { %770 = vmatpush1.bf16.msra.mxu1 %v1439_v17 }
 0x743   :  { %939 = vmatprep.subr.bf16.mxu1 %v1420_v3 }
 0x808   :  { %v621_v21 = vpop.f32.mrb[8].mxu1 }
 0x809   :  { %v628_v22 = vadd.f32 %v621_v21, %v217_v19  ;;  %v623_v23 = vpop.f32.mrb[9].mxu1 }
 0x80a   :  { %v629_v24 = vadd.f32 %v623_v23, %v219_v20  ;;  %v625_v25 = vpop.f32.mrb[10].mxu1  ;;  %v227_v23 = vadd.f32 %v1509_v36, %v1469_v26 }
 0x80b   :  { %v626_v28 = vpop.f32.mrb[11].mxu1  ;;  %v1095_v30 = vmul.f32 -1.442695, %v628_v22 }
 0x80c   :  { %1183 = vtanh.f32 %v629_v24  ;;  %v1096_v47 = vmul.f32 -1.442695, %v629_v24 }
 0x80d   :  { %1185 = vpow2.f32 %v1095_v30 }
 0x816   :  { %v1184_v29 = vpop.eup %1183 }
 0x817   :  { %645 = vrot.lane.b32.xlu0 %v1184_v29, %s1341_s1  ;;  %v1186_v31 = vpop.eup %1185 }
 0x818   :  { %v636_v3 = vadd.f32 1.0, %v1186_v31 }
 0x81a   :  { %1187 = vrcp.f32 %v636_v3 }
 0x824   :  { %v1188_v38 = vpop.eup %1187 }
 0x825   :  { %v643_v33 = vmul.f32 %v1188_v38, %v565_v2 }
 0x889   :  { %v646_v32 = vpop.permute.xlu0 %645 }
 0x88a   :  { %v648_v39 = vmul.f32 %v1188_v38, %v646_v32 }
 0x88c   :  { %650 = vrot.lane.b32.xlu1 %v648_v39, %s1341_s1 }
 0x8fe   :  { %v651_v44 = vpop.permute.xlu1 %650 }
 0x8ff   :  { %v653_v45 = vadd.f32 %v651_v44, %v643_v33 }
 0x901   :  { %1189 = vtanh.f32 %v653_v45 }
 0x902   :  { %1191 = vpow2.f32 %v1096_v47 }
 0x90b   :  { %v1190_v46 = vpop.eup %1189 }
 0x90c   :  { %656 = vrot.lane.b32.xlu0 %v1190_v46, %s1341_s1  ;;  %v1192_v48 = vpop.eup %1191 }
 0x90d   :  { %v637_v49 = vadd.f32 1.0, %v1192_v48  ;;  %v233_v48 = vadd.f32 %v1513_v40, %v1469_v26 }
 0x90f   :  { %1193 = vrcp.f32 %v637_v49  ;;  %v235_v49 = vadd.f32 %v1515_v41, %v1471_v27 }
 0x919   :  { %v1194_v50 = vpop.eup %1193 }
 0x97e   :  { %v657_v51 = vpop.permute.xlu0 %656 }
 0x97f   :  { %v659_v52 = vmul.f32 %v1194_v50, %v657_v51 }
 0x981   :  { %661 = vst.msk [vmem:[#allocation11 + $0x18] sm:$0xff] %vm64_vm0, %v659_v52  ;;  %v671_v53 = vpack.c.bf16 %v659_v52, %v659_v52 }
 0x983   :  { %1097 = vmatmul.mubr.msk.bf16.vlgmr.msra.gmra.mrb[20].mxu0 %vm64_vm0, %v671_v53 }
 0x984   :  { %852 = vmatpush1.bf16.msra.mxu0 %v1422_v5  ;;  %883 = vmatprep.mubr.bf16.mxu0 %v1344_v0 }
 0x985   :  { %853 = vmatprep.subr.bf16.mxu0 %v1426_v7 }
 0x988   :  { %854 = vmatpush1.bf16.msra.mxu0 %v1428_v9 }
 0x989   :  { %855 = vmatprep.subr.bf16.mxu0 %v1431_v11 }
 0x98c   :  { %856 = vmatpush1.bf16.msra.mxu0 %v1433_v13 }
 0x98d   :  { %857 = vmatprep.subr.bf16.mxu0 %v1437_v15 }
 0x990   :  { %858 = vmatpush1.bf16.msra.mxu0 %v1439_v17 }
 0xa56   :  { %v709_v56 = vpop.f32.mrb[20].mxu0 }
 0xa57   :  { %v716_v57 = vadd.f32 %v709_v56, %v223_v54  ;;  %v711_v58 = vpop.f32.mrb[21].mxu0 }
 0xa58   :  { %v717_v59 = vadd.f32 %v711_v58, %v225_v55  ;;  %v713_v60 = vpop.f32.mrb[22].mxu0 }
 0xa59   :  { %v714_v61 = vpop.f32.mrb[23].mxu0  ;;  %v1098_v63 = vmul.f32 -1.442695, %v716_v57 }
 0xa5a   :  { %1195 = vtanh.f32 %v717_v59  ;;  %v1099_v14 = vmul.f32 -1.442695, %v717_v59 }
 0xa5b   :  { %1197 = vpow2.f32 %v1098_v63 }
 0xa64   :  { %v1196_v62 = vpop.eup %1195 }
 0xa65   :  { %733 = vrot.lane.b32.xlu1 %v1196_v62, %s1341_s1  ;;  %v1198_v1 = vpop.eup %1197 }
 0xa66   :  { %v724_v2 = vadd.f32 1.0, %v1198_v1 }
 0xa68   :  { %1199 = vrcp.f32 %v724_v2 }
 0xa72   :  { %v1200_v4 = vpop.eup %1199 }
 0xa73   :  { %v731_v35 = vmul.f32 %v1200_v4, %v653_v45 }
 0xad7   :  { %v734_v34 = vpop.permute.xlu1 %733 }
 0xad8   :  { %v736_v6 = vmul.f32 %v1200_v4, %v734_v34 }
 0xada   :  { %738 = vrot.lane.b32.xlu0 %v736_v6, %s1341_s1 }
 0xb4c   :  { %v739_v8 = vpop.permute.xlu0 %738 }
 0xb4d   :  { %v741_v10 = vadd.f32 %v739_v8, %v731_v35 }
 0xb4f   :  { %1201 = vtanh.f32 %v741_v10 }
 0xb50   :  { %1203 = vpow2.f32 %v1099_v14  ;;  %v239_v14 = vadd.f32 %v1519_v43, %v1471_v27 }
 0xb59   :  { %v1202_v12 = vpop.eup %1201 }
 0xb5a   :  { %744 = vrot.lane.b32.xlu1 %v1202_v12, %s1341_s1  ;;  %v1204_v16 = vpop.eup %1203  ;;  %v237_v12 = vadd.f32 %v1517_v42, %v1469_v26 }
 0xb5b   :  { %v725_v18 = vadd.f32 1.0, %v1204_v16 }
 0xb5d   :  { %1205 = vrcp.f32 %v725_v18 }
 0xb67   :  { %v1206_v19 = vpop.eup %1205 }
 0xbcc   :  { %v745_v20 = vpop.permute.xlu1 %744 }
 0xbcd   :  { %v747_v21 = vmul.f32 %v1206_v19, %v745_v20 }
 0xbcf   :  { %749 = vst.msk [vmem:[#allocation11 + $0x20] sm:$0xff] %vm64_vm0, %v747_v21  ;;  %v759_v22 = vpack.c.bf16 %v747_v21, %v747_v21 }
 0xbd1   :  { %1100 = vmatmul.mubr.msk.bf16.vlgmr.msra.gmra.mrb[12].mxu1 %vm64_vm0, %v759_v22 }
 0xbd2   :  { %940 = vmatpush1.bf16.msra.mxu1 %v1422_v5  ;;  %971 = vmatprep.mubr.bf16.mxu1 %v1344_v0  ;;  %v229_v5 = vadd.f32 %v1511_v37, %v1471_v27 }
 0xbd3   :  { %941 = vmatprep.subr.bf16.mxu1 %v1426_v7 }
 0xbd6   :  { %942 = vmatpush1.bf16.msra.mxu1 %v1428_v9 }
 0xbd7   :  { %943 = vmatprep.subr.bf16.mxu1 %v1431_v11 }
 0xbda   :  { %944 = vmatpush1.bf16.msra.mxu1 %v1433_v13 }
 0xbdb   :  { %945 = vmatprep.subr.bf16.mxu1 %v1437_v15 }
 0xbde   :  { %946 = vmatpush1.bf16.msra.mxu1 %v1439_v17 }
 0xca4   :  { %v797_v24 = vpop.f32.mrb[12].mxu1 }
 0xca5   :  { %v804_v0 = vadd.f32 %v797_v24, %v227_v23  ;;  %v799_v25 = vpop.f32.mrb[13].mxu1 }
 0xca6   :  { %v805_v7 = vadd.f32 %v799_v25, %v229_v5  ;;  %v801_v28 = vpop.f32.mrb[14].mxu1 }
 0xca7   :  { %v802_v9 = vpop.f32.mrb[15].mxu1  ;;  %v1101_v13 = vmul.f32 -1.442695, %v804_v0 }
 0xca8   :  { %1207 = vtanh.f32 %v805_v7  ;;  %v1102_v32 = vmul.f32 -1.442695, %v805_v7 }
 0xca9   :  { %1209 = vpow2.f32 %v1101_v13 }
 0xcb2   :  { %v1208_v11 = vpop.eup %1207 }
 0xcb3   :  { %821 = vrot.lane.b32.xlu0 %v1208_v11, %s1341_s1  ;;  %v1210_v15 = vpop.eup %1209 }
 0xcb4   :  { %v812_v17 = vadd.f32 1.0, %v1210_v15 }
 0xcb6   :  { %1211 = vrcp.f32 %v812_v17 }
 0xcc0   :  { %v1212_v29 = vpop.eup %1211 }
 0xcc1   :  { %v819_v37 = vmul.f32 %v1212_v29, %v741_v10 }
 0xd25   :  { %v822_v36 = vpop.permute.xlu0 %821 }
 0xd26   :  { %v824_v30 = vmul.f32 %v1212_v29, %v822_v36 }
 0xd28   :  { %826 = vrot.lane.b32.xlu1 %v824_v30, %s1341_s1 }
 0xd9a   :  { %v827_v31 = vpop.permute.xlu1 %826 }
 0xd9b   :  { %v829_v3 = vadd.f32 %v827_v31, %v819_v37 }
 0xd9d   :  { %1213 = vtanh.f32 %v829_v3 }
 0xd9e   :  { %1215 = vpow2.f32 %v1102_v32 }
 0xda7   :  { %v1214_v38 = vpop.eup %1213 }
 0xda8   :  { %832 = vrot.lane.b32.xlu0 %v1214_v38, %s1341_s1  ;;  %v1216_v39 = vpop.eup %1215 }
 0xda9   :  { %v813_v33 = vadd.f32 1.0, %v1216_v39 }
 0xdab   :  { %1217 = vrcp.f32 %v813_v33 }
 0xdb5   :  { %v1218_v44 = vpop.eup %1217 }
 0xe1a   :  { %v833_v45 = vpop.permute.xlu0 %832 }
 0xe1b   :  { %v835_v46 = vmul.f32 %v1218_v44, %v833_v45 }
 0xe1d   :  { %837 = vst.msk [vmem:[#allocation11 + $0x28] sm:$0xff] %vm64_vm0, %v835_v46  ;;  %v847_v47 = vpack.c.bf16 %v835_v46, %v835_v46 }
 0xe1f   :  { %1103 = vmatmul.mubr.msk.bf16.vlgmr.msra.gmra.mrb[24].mxu0 %vm64_vm0, %v847_v47 }
 0xef2   :  { %v885_v50 = vpop.f32.mrb[24].mxu0 }
 0xef3   :  { %v892_v51 = vadd.f32 %v885_v50, %v233_v48  ;;  %v887_v52 = vpop.f32.mrb[25].mxu0 }
 0xef4   :  { %v893_v53 = vadd.f32 %v887_v52, %v235_v49  ;;  %v889_v54 = vpop.f32.mrb[26].mxu0 }
 0xef5   :  { %v890_v55 = vpop.f32.mrb[27].mxu0  ;;  %v1104_v57 = vmul.f32 -1.442695, %v892_v51 }
 0xef6   :  { %1219 = vtanh.f32 %v893_v53  ;;  %v1105_v2 = vmul.f32 -1.442695, %v893_v53 }
 0xef7   :  { %1221 = vpow2.f32 %v1104_v57 }
 0xf00   :  { %v1220_v56 = vpop.eup %1219 }
 0xf01   :  { %909 = vrot.lane.b32.xlu1 %v1220_v56, %s1341_s1  ;;  %v1222_v58 = vpop.eup %1221 }
 0xf02   :  { %v900_v59 = vadd.f32 1.0, %v1222_v58 }
 0xf04   :  { %1223 = vrcp.f32 %v900_v59 }
 0xf0e   :  { %v1224_v60 = vpop.eup %1223 }
 0xf0f   :  { %v907_v41 = vmul.f32 %v1224_v60, %v829_v3 }
 0xf73   :  { %v910_v40 = vpop.permute.xlu1 %909 }
 0xf74   :  { %v912_v61 = vmul.f32 %v1224_v60, %v910_v40 }
 0xf76   :  { %914 = vrot.lane.b32.xlu0 %v912_v61, %s1341_s1 }
 0xfe8   :  { %v915_v62 = vpop.permute.xlu0 %914 }
 0xfe9   :  { %v917_v63 = vadd.f32 %v915_v62, %v907_v41 }
 0xfeb   :  { %1225 = vtanh.f32 %v917_v63 }
 0xfec   :  { %1227 = vpow2.f32 %v1105_v2 }
 0xff5   :  { %v1226_v1 = vpop.eup %1225 }
 0xff6   :  { %920 = vrot.lane.b32.xlu1 %v1226_v1, %s1341_s1  ;;  %v1228_v4 = vpop.eup %1227 }
 0xff7   :  { %v901_v34 = vadd.f32 1.0, %v1228_v4 }
 0xff9   :  { %1229 = vrcp.f32 %v901_v34 }
0x1003   :  { %v1230_v6 = vpop.eup %1229 }
0x1068   :  { %v921_v35 = vpop.permute.xlu1 %920 }
0x1069   :  { %v923_v8 = vmul.f32 %v1230_v6, %v921_v35 }
0x106b   :  { %925 = vst.msk [vmem:[#allocation11 + $0x30] sm:$0xff] %vm64_vm0, %v923_v8  ;;  %v935_v10 = vpack.c.bf16 %v923_v8, %v923_v8 }
0x106d   :  { %1106 = vmatmul.mubr.msk.bf16.vlgmr.msra.gmra.mrb[16].mxu1 %vm64_vm0, %v935_v10 }
0x1140   :  { %v973_v16 = vpop.f32.mrb[16].mxu1 }
0x1141   :  { %v980_v18 = vadd.f32 %v973_v16, %v237_v12  ;;  %v975_v19 = vpop.f32.mrb[17].mxu1 }
0x1142   :  { %v981_v20 = vadd.f32 %v975_v19, %v239_v14  ;;  %v977_v21 = vpop.f32.mrb[18].mxu1 }
0x1143   :  { %v978_v22 = vpop.f32.mrb[19].mxu1  ;;  %v1107_v5 = vmul.f32 -1.442695, %v980_v18 }
0x1144   :  { %1231 = vtanh.f32 %v981_v20  ;;  %v1108_v9 = vmul.f32 -1.442695, %v981_v20 }
0x1145   :  { %1233 = vpow2.f32 %v1107_v5 }
0x114e   :  { %v1232_v23 = vpop.eup %1231 }
0x114f   :  { %997 = vrot.lane.b32.xlu0 %v1232_v23, %s1341_s1  ;;  %v1234_v24 = vpop.eup %1233 }
0x1150   :  { %v988_v0 = vadd.f32 1.0, %v1234_v24 }
0x1152   :  { %1235 = vrcp.f32 %v988_v0 }
0x115c   :  { %v1236_v25 = vpop.eup %1235 }
0x115d   :  { %v995_v27 = vmul.f32 %v1236_v25, %v917_v63 }
0x11c1   :  { %v998_v26 = vpop.permute.xlu0 %997 }
0x11c2   :  { %v1000_v42 = vmul.f32 %v1236_v25, %v998_v26 }
0x11c4   :  { %1002 = vrot.lane.b32.xlu1 %v1000_v42, %s1341_s1 }
0x1236   :  { %v1003_v43 = vpop.permute.xlu1 %1002 }
0x1237   :  { %v1005_v7 = vadd.f32 %v1003_v43, %v995_v27 }
0x1239   :  { %1237 = vtanh.f32 %v1005_v7  ;;  %1016 = vrot.lane.b32.xlu1 %v1005_v7, %s1341_s1 }
0x123a   :  { %1239 = vpow2.f32 %v1108_v9 }
0x1243   :  { %v1238_v28 = vpop.eup %1237 }
0x1244   :  { %1008 = vrot.lane.b32.xlu0 %v1238_v28, %s1341_s1  ;;  %v1240_v11 = vpop.eup %1239 }
0x1245   :  { %v989_v13 = vadd.f32 1.0, %v1240_v11 }
0x1247   :  { %1241 = vrcp.f32 %v989_v13 }
0x1251   :  { %v1242_v17 = vpop.eup %1241 }
0x12ab   :  { %v1017_v15 = vpop.permute.xlu1 %1016 }
0x12ac   :  { %1019 = vst.msk [vmem:[#allocation4] sm:$0xff] %vm64_vm0, %v1017_v15 }
0x12b6   :  { %v1009_v29 = vpop.permute.xlu0 %1008 }
0x12b7   :  { %v1011_v36 = vmul.f32 %v1242_v17, %v1009_v29 }
0x12b9   :  { %1013 = vst.msk [vmem:[#allocation11 + $0x38] sm:$0xff] %vm64_vm0, %v1011_v36  ;;  %1014 = vst.msk [vmem:[#allocation3] sm:$0xff] %vm64_vm0, %v1011_v36 }
0x12ba   :  { %1320 = shalt.err (!%p1317_p0)
}
0x12bb   :  { %s1321_s8 = scalar_lea.hbm %s1630_s4, 1024 }
0x12bc   :  { %p1322_p1 = scmp.ne.s32.totalorder %s1630_s4, %s1321_s8  ;;  %p1325_p2 = scmp.lt.u32.totalorder %s1321_s8, %s1630_s4 }
0x12be   :  { %p1327_p3 = pnand %p1325_p2, %p1322_p1 }
0x12c0   :  { %1330 = shalt.err (!%p1327_p3)
}
0x12c1   :  { %1031 = dma.vmem_to_hbm [thread:$0]  %s1026_s30, 1024, %s1630_s4, [#allocation7], %s1338_s25, %s1338_s25, %s1339_s26  }
0x12c2   :  { %1335 = dma.done.wait [#allocation7], 1024  }
0x12c3   :  { %1336 = vsyncadd [#allocation7], 4294966272 }
0x12c4   :  { %1035 = vsyncpa [#allocation6], 1 }
0x12c5   :  { %1036 = vsyncpa [#allocation9], 1 }
0x12c6   :  { %1037 = vsyncpa [#allocation7], 1 }

</bundles_post_ra>
